<compile_context>
chip_gen: v5e
topology: v5e:2x2
jax: 0.10.0
libtpu: 0.0.40
codegen_flags: <defaults>
</compile_context>

<pallas_src>
import functools

import jax
import jax.numpy as jnp
from jax import lax
from jax.experimental import pallas as pl
from jax.experimental.pallas import tpu as pltpu


_VMEM_HARD_CAP = 48 * 1024 * 1024   # safe per-TC on v5e/v6e/v7x (v7x: 64 MiB/TC)
_VMEM_HEADROOM = 4 * 1024 * 1024    # Mosaic internal scratch / misc buffers
_VMEM_FLOOR = 16 * 1024 * 1024      # never request less than this scoped VMEM
_F32_TEMP_TILES = 2                 # ~live f32 temporaries inside the body
_ROW_TILE_CAP = 512                 # ~85% HBM roofline; good 2-TC load balance


def _layernorm_add_kernel(x_ref, y_ref, g_ref, b_ref, o_ref, *, eps, d_model):
    # Residual add fused with LayerNorm; f32 accumulation, two-pass variance.
    s = x_ref[...].astype(jnp.float32) + y_ref[...].astype(jnp.float32)
    inv_n = jnp.float32(1.0 / d_model)
    mean = jnp.sum(s, axis=-1, keepdims=True) * inv_n
    centered = s - mean
    var = jnp.sum(centered * centered, axis=-1, keepdims=True) * inv_n
    inv_std = lax.rsqrt(var + eps)                      # EUP slot, effectively free
    o_ref[...] = (centered * inv_std * g_ref[...] + b_ref[...]).astype(o_ref.dtype)


def _layernorm_add_folded_kernel(x_ref, y_ref, g_ref, b_ref, seg_ref, o_ref,
                                 *, eps, d_model):
    # Lane-folded layout: each kernel row holds k = width // d_model original
    # rows side-by-side along the lane axis. Per-original-row sums are computed
    # with a (width x width) block-diagonal 0/1 matrix on the MXU (idle in this
    # kernel, hides under DMA); the result is already broadcast across each
    # segment's lanes, so everything else stays elementwise and lane-dense.
    s = x_ref[...].astype(jnp.float32) + y_ref[...].astype(jnp.float32)
    inv_n = jnp.float32(1.0 / d_model)
    seg = seg_ref[...]
    mean = jnp.dot(s, seg, preferred_element_type=jnp.float32,
                   precision=lax.Precision.HIGHEST) * inv_n
    centered = s - mean
    var = jnp.dot(centered * centered, seg, preferred_element_type=jnp.float32,
                  precision=lax.Precision.HIGHEST) * inv_n
    inv_std = lax.rsqrt(var + eps)
    o_ref[...] = (centered * inv_std * g_ref[...] + b_ref[...]).astype(o_ref.dtype)


def _sublane_multiple(dtype):
    # Sub-32-bit dtypes pack along sublanes: f32 -> 8, bf16 -> 16, int8/fp8 -> 32.
    itemsize = jnp.dtype(dtype).itemsize
    return max(8, 32 // itemsize)


def _choose_row_tile(rows, width, dtype, budget_bytes):
    """Largest sublane-aligned row tile whose working set fits `budget_bytes`,
    capped at _ROW_TILE_CAP, split so the grid has >= 2 steps whenever possible
    (keeps both v7x TensorCores busy under dimension_semantics=('parallel',))."""
    itemsize = jnp.dtype(dtype).itemsize
    sublane = _sublane_multiple(dtype)
    # Per row: 3 I/O streams (x, y, out) x 2 pipeline buffers in the I/O dtype,
    # plus the f32 temporaries live inside the body.
    bytes_per_row = width * (3 * 2 * itemsize + _F32_TEMP_TILES * 4)
    if bytes_per_row * sublane > budget_bytes:
        # TODO(synk): fall back to a d_model-chunked two-pass (accumulate
        # sum / sum-of-squares across lane chunks) for extreme d_model instead
        # of erroring.
        raise ValueError(
            f"d_model={width} is too large for a single-tile pass within the "
            f"{budget_bytes}-byte VMEM budget")
    tile = budget_bytes // bytes_per_row
    tile = min(tile, _ROW_TILE_CAP)
    rows_padded = pl.cdiv(rows, sublane) * sublane
    tile = min(tile, rows_padded)
    tile = max((tile // sublane) * sublane, sublane)
    # Guarantee >= 2 grid steps when the data allows it (megacore utilization).
    if rows_padded >= 2 * sublane and pl.cdiv(rows, tile) < 2:
        tile = max((pl.cdiv(tile, 2) // sublane) * sublane, sublane)
    return tile


def _vmem_limit_bytes(row_tile, width, itemsize, extra_bytes=0):
    # Footprint of this kernel's buffers + headroom, clamped to a range that
    # is valid per-TensorCore on every generation.
    streams = 3 * 2 * row_tile * width * itemsize       # x, y, out double-buffered
    temps = _F32_TEMP_TILES * row_tile * width * 4      # in-body f32 temporaries
    params = 2 * 2 * width * 4 + 2 * extra_bytes        # gamma/beta (+ seg matrix)
    footprint = streams + temps + params + _VMEM_HEADROOM
    return int(min(max(footprint, _VMEM_FLOOR), _VMEM_HARD_CAP))


def layer_normalization(x, y, gamma, beta, *, eps=1e-5, row_tile=None):
    """LayerNorm(x + y) over the last axis (d_model), PyTorch nn.LayerNorm semantics."""
    assert x.shape == y.shape
    orig_shape = x.shape
    d_model = orig_shape[-1]
    assert gamma.shape == (d_model,) and beta.shape == (d_model,)

    rows = 1
    for s in orig_shape[:-1]:
        rows *= s

    itemsize = jnp.dtype(x.dtype).itemsize
    budget = _VMEM_HARD_CAP - _VMEM_HEADROOM

    # Narrow-d_model lane folding: present a lane-dense (width == 128) layout
    # to the BlockSpecs so DMA bursts and output stores are unmasked.
    fold = (d_model < 128 and 128 % d_model == 0
            and rows % (128 // d_model) == 0)

    if fold:
        k = 128 // d_model
        width = k * d_model                                  # == 128
        rows_eff = rows // k
        x2 = x.reshape(rows_eff, width)
        y2 = y.reshape(rows_eff, width)
        g2 = jnp.tile(gamma.astype(jnp.float32), k).reshape(1, width)
        b2 = jnp.tile(beta.astype(jnp.float32), k).reshape(1, width)
        lane = jnp.arange(width) // d_model
        seg = (lane[:, None] == lane[None, :]).astype(jnp.float32)
        extra_inputs = (seg,)
        extra_specs = [pl.BlockSpec((width, width), lambda i: (0, 0))]
        extra_bytes = width * width * 4
        kernel = functools.partial(_layernorm_add_folded_kernel,
                                   eps=eps, d_model=d_model)
    else:
        # TODO(synk): for d_model > 128 that is not a multiple of 128, a
        # pad-and-fold variant would restore fully dense lanes; this path
        # relies on Mosaic masking the padded lanes in the axis=-1 reductions.
        width = d_model
        rows_eff = rows
        x2 = x.reshape(rows_eff, width)
        y2 = y.reshape(rows_eff, width)
        g2 = gamma.astype(jnp.float32).reshape(1, width)
        b2 = beta.astype(jnp.float32).reshape(1, width)
        extra_inputs = ()
        extra_specs = []
        extra_bytes = 0
        kernel = functools.partial(_layernorm_add_kernel,
                                   eps=eps, d_model=d_model)

    if row_tile is None:
        row_tile = _choose_row_tile(rows_eff, width, x.dtype, budget)

    grid = (pl.cdiv(rows_eff, row_tile),)
    vmem_limit = _vmem_limit_bytes(row_tile, width, itemsize, extra_bytes)

    # Note: callers that donate `x` could additionally pass
    # input_output_aliases={0: 0} to drop the output HBM allocation; omitted
    # here since the wrapper does not own the buffers.
    out2 = pl.pallas_call(
        kernel,
        out_shape=jax.ShapeDtypeStruct((rows_eff, width), x.dtype),
        grid_spec=pltpu.PrefetchScalarGridSpec(
            num_scalar_prefetch=0,
            grid=grid,
            in_specs=[
                pl.BlockSpec((row_tile, width), lambda i: (i, 0)),
                pl.BlockSpec((row_tile, width), lambda i: (i, 0)),
                pl.BlockSpec((1, width), lambda i: (0, 0)),
                pl.BlockSpec((1, width), lambda i: (0, 0)),
            ] + extra_specs,
            out_specs=pl.BlockSpec((row_tile, width), lambda i: (i, 0)),
        ),
        compiler_params=pltpu.CompilerParams(
            dimension_semantics=("parallel",),   # shard row grid across TCs (v7x)
            vmem_limit_bytes=vmem_limit,
        ),
        # Default double buffering kept: kernel already saturates HBM bandwidth.
    )(x2, y2, g2, b2, *extra_inputs)

    return out2.reshape(orig_shape)


def _reference(x, y, gamma, beta, eps=1e-5):
    s = (x + y).astype(jnp.float32)
    mean = jnp.mean(s, axis=-1, keepdims=True)
    var = jnp.mean((s - mean) ** 2, axis=-1, keepdims=True)
    return ((s - mean) / jnp.sqrt(var + eps)) * gamma.astype(jnp.float32) \
        + beta.astype(jnp.float32)


if __name__ == "__main__":
    key = jax.random.PRNGKey(0)

    # 1) Module-implied shapes (batch=2, seq=8, d_model=32): narrow-d_model
    #    lane-folded path (k = 4 rows per vreg row, dense 128-lane output).
    k1, k2 = jax.random.split(key)
    x = jax.random.normal(k1, (2, 8, 32), dtype=jnp.float32)
    y = jax.random.normal(k2, (2, 8, 32), dtype=jnp.float32)
    gamma = jnp.ones((32,), dtype=jnp.float32)   # nn.LayerNorm default init
    beta = jnp.zeros((32,), dtype=jnp.float32)
    out = jax.block_until_ready(layer_normalization(x, y, gamma, beta))
    ref = _reference(x, y, gamma, beta)
    assert jnp.allclose(out, ref, atol=2e-5, rtol=1e-5), "mismatch (folded d=32)"

    # 2) Standard path, non-divisible row count, affine params != identity.
    k3, k4, k5, k6 = jax.random.split(k2, 4)
    xb = jax.random.normal(k3, (3, 137, 256), dtype=jnp.float32)
    yb = jax.random.normal(k4, (3, 137, 256), dtype=jnp.float32)
    gb = 1.0 + 0.1 * jax.random.normal(k5, (256,), dtype=jnp.float32)
    bb = 0.1 * jax.random.normal(k6, (256,), dtype=jnp.float32)
    outb = jax.block_until_ready(layer_normalization(xb, yb, gb, bb))
    assert jnp.allclose(outb, _reference(xb, yb, gb, bb), atol=1e-4, rtol=1e-4), \
        "mismatch (d=256, ragged rows)"

    # 3) d_model not a multiple of 128 (lane-masked reductions).
    k7, k8 = jax.random.split(k6)
    xc = jax.random.normal(k7, (2, 37, 137), dtype=jnp.float32)
    yc = jax.random.normal(k8, (2, 37, 137), dtype=jnp.float32)
    gc = jnp.ones((137,), dtype=jnp.float32)
    bc = jnp.zeros((137,), dtype=jnp.float32)
    outc = jax.block_until_ready(layer_normalization(xc, yc, gc, bc))
    assert jnp.allclose(outc, _reference(xc, yc, gc, bc), atol=1e-4, rtol=1e-4), \
        "mismatch (d=137)"

    # 4) bf16 I/O (sublane=16 path), f32 accumulation inside the kernel.
    k9, k10 = jax.random.split(k8)
    xd = jax.random.normal(k9, (4, 16, 512), dtype=jnp.bfloat16)
    yd = jax.random.normal(k10, (4, 16, 512), dtype=jnp.bfloat16)
    gd = jnp.ones((512,), dtype=jnp.bfloat16)
    bd = jnp.zeros((512,), dtype=jnp.bfloat16)
    outd = jax.block_until_ready(layer_normalization(xd, yd, gd, bd))
    refd = _reference(xd, yd, gd, bd)
    assert jnp.allclose(outd.astype(jnp.float32), refd, atol=2e-2, rtol=2e-2), \
        "mismatch (bf16)"

    print("KERNEL_OK")
</pallas_src>

<mosaic_0001>
module attributes {stable_mosaic.version = 11 : i64} {
  func.func @_layernorm_add_folded_kernel(%arg0: i32, %arg1: memref<8x128xf32, #tpu.memory_space<vmem>>, %arg2: memref<8x128xf32, #tpu.memory_space<vmem>>, %arg3: memref<1x128xf32, #tpu.memory_space<vmem>>, %arg4: memref<1x128xf32, #tpu.memory_space<vmem>>, %arg5: memref<128x128xf32, #tpu.memory_space<vmem>>, %arg6: memref<8x128xf32, #tpu.memory_space<vmem>>) attributes {dimension_semantics = [#tpu.dimension_semantics<parallel>], iteration_bounds = array<i64: 1>, scalar_prefetch = 0 : i64, scratch_operands = 0 : i64, tpu.core_type = #tpu.core_type<tc>, window_params = [{transform_indices = @transform_0, window_bounds = array<i64: 8, 128>}, {transform_indices = @transform_1, window_bounds = array<i64: 8, 128>}, {pipeline_mode = #tpu.pipeline_mode<synchronous>, transform_indices = @transform_2, window_bounds = array<i64: 1, 128>}, {pipeline_mode = #tpu.pipeline_mode<synchronous>, transform_indices = @transform_3, window_bounds = array<i64: 1, 128>}, {pipeline_mode = #tpu.pipeline_mode<synchronous>, transform_indices = @transform_4, window_bounds = array<i64: 128, 128>}, {transform_indices = @transform_5, window_bounds = array<i64: 8, 128>}]} {
    %c0 = arith.constant 0 : index
    %c0_0 = arith.constant 0 : index
    %0 = vector.load %arg1[%c0, %c0_0] : memref<8x128xf32, #tpu.memory_space<vmem>>, vector<8x128xf32>
    %c0_1 = arith.constant 0 : index
    %c0_2 = arith.constant 0 : index
    %1 = vector.load %arg2[%c0_1, %c0_2] : memref<8x128xf32, #tpu.memory_space<vmem>>, vector<8x128xf32>
    %2 = arith.addf %0, %1 : vector<8x128xf32>
    %c0_3 = arith.constant 0 : index
    %c0_4 = arith.constant 0 : index
    %3 = vector.load %arg5[%c0_3, %c0_4] : memref<128x128xf32, #tpu.memory_space<vmem>>, vector<128x128xf32>
    %cst = arith.constant dense<0.000000e+00> : vector<8x128xf32>
    %4 = tpu.matmul %2, %3, %cst {dimension_numbers = #tpu.dot_dimension_numbers<[1], [0], [0], [1], [0, 0, 1, 1], [], []>, precision = #tpu.contract_precision<fp32>} : vector<8x128xf32>, vector<128x128xf32>, vector<8x128xf32> -> vector<8x128xf32>
    %cst_5 = arith.constant 3.125000e-02 : f32
    %5 = vector.broadcast %cst_5 : f32 to vector<8x128xf32>
    %6 = arith.mulf %4, %5 : vector<8x128xf32>
    %7 = arith.subf %2, %6 : vector<8x128xf32>
    %8 = arith.mulf %7, %7 : vector<8x128xf32>
    %cst_6 = arith.constant dense<0.000000e+00> : vector<8x128xf32>
    %9 = tpu.matmul %8, %3, %cst_6 {dimension_numbers = #tpu.dot_dimension_numbers<[1], [0], [0], [1], [0, 0, 1, 1], [], []>, precision = #tpu.contract_precision<fp32>} : vector<8x128xf32>, vector<128x128xf32>, vector<8x128xf32> -> vector<8x128xf32>
    %cst_7 = arith.constant 3.125000e-02 : f32
    %10 = vector.broadcast %cst_7 : f32 to vector<8x128xf32>
    %11 = arith.mulf %9, %10 : vector<8x128xf32>
    %cst_8 = arith.constant 9.99999974E-6 : f32
    %12 = vector.broadcast %cst_8 : f32 to vector<8x128xf32>
    %13 = arith.addf %11, %12 : vector<8x128xf32>
    %14 = math.rsqrt %13 : vector<8x128xf32>
    %15 = arith.mulf %7, %14 : vector<8x128xf32>
    %c0_9 = arith.constant 0 : index
    %c0_10 = arith.constant 0 : index
    %16 = vector.load %arg3[%c0_9, %c0_10] : memref<1x128xf32, #tpu.memory_space<vmem>>, vector<1x128xf32>
    %17 = vector.broadcast %16 : vector<1x128xf32> to vector<8x128xf32>
    %18 = arith.mulf %15, %17 : vector<8x128xf32>
    %c0_11 = arith.constant 0 : index
    %c0_12 = arith.constant 0 : index
    %19 = vector.load %arg4[%c0_11, %c0_12] : memref<1x128xf32, #tpu.memory_space<vmem>>, vector<1x128xf32>
    %20 = vector.broadcast %19 : vector<1x128xf32> to vector<8x128xf32>
    %21 = arith.addf %18, %20 : vector<8x128xf32>
    %c0_13 = arith.constant 0 : index
    %c0_14 = arith.constant 0 : index
    %22 = vector.load %arg6[%c0_13, %c0_14] : memref<8x128xf32, #tpu.memory_space<vmem>>, vector<8x128xf32>
    tpu.vector_store %arg6[%c0_13, %c0_14], %21 {strides = array<i32>} : memref<8x128xf32, #tpu.memory_space<vmem>>, vector<8x128xf32>,
    return
  }
  func.func @transform_0(%arg0: i32) -> (i32, i32) {
    %c0_i32 = arith.constant 0 : i32
    %c0_i32_0 = arith.constant 0 : i32
    return %arg0, %c0_i32 : i32, i32
  }
  func.func @transform_1(%arg0: i32) -> (i32, i32) {
    %c0_i32 = arith.constant 0 : i32
    %c0_i32_0 = arith.constant 0 : i32
    return %arg0, %c0_i32 : i32, i32
  }
  func.func @transform_2(%arg0: i32) -> (i32, i32) {
    %c0_i32 = arith.constant 0 : i32
    %c0_i32_0 = arith.constant 0 : i32
    %c0_i32_1 = arith.constant 0 : i32
    return %c0_i32, %c0_i32_0 : i32, i32
  }
  func.func @transform_3(%arg0: i32) -> (i32, i32) {
    %c0_i32 = arith.constant 0 : i32
    %c0_i32_0 = arith.constant 0 : i32
    %c0_i32_1 = arith.constant 0 : i32
    return %c0_i32, %c0_i32_0 : i32, i32
  }
  func.func @transform_4(%arg0: i32) -> (i32, i32) {
    %c0_i32 = arith.constant 0 : i32
    %c0_i32_0 = arith.constant 0 : i32
    %c0_i32_1 = arith.constant 0 : i32
    return %c0_i32, %c0_i32_0 : i32, i32
  }
  func.func @transform_5(%arg0: i32) -> (i32, i32) {
    %c0_i32 = arith.constant 0 : i32
    %c0_i32_0 = arith.constant 0 : i32
    return %arg0, %c0_i32 : i32, i32
  }
}

</mosaic_0001>

<bundles_post_ra>
// kernel: tpu_custom_call.1
= control target key start
LH: loop header
LB: loop body
LE: loop exit
PB: predicated region body
PF: predicated region fallthrough
CT: control target
= control target key end

     0   :  { %10 = vsyncpa [#allocation3], 0  ;;  %s1390_s0 = inlined_call_operand.hbm [shape: f32[4,128], index: 0, kind: input, shape index: {}]   ;;  %s1391_s1 = inlined_call_operand.hbm [shape: f32[4,128], index: 1, kind: input, shape index: {}]   ;;  %s1392_s2 = inlined_call_operand.vmem [shape: f32[1,128], index: 2, kind: input, shape index: {}]   ;;  %s1393_s3 = inlined_call_operand.vmem [shape: f32[1,128], index: 3, kind: input, shape index: {}]   ;;  %s1394_s4 = inlined_call_operand.hbm [shape: f32[128,128], index: 4, kind: input, shape index: {}]   ;;  %s1395_s5 = inlined_call_operand.hbm [shape: f32[4,128], index: 5, kind: output, shape index: {}]  }
   0x1   :  { %11 = vsyncpa [#allocation6], 0 }
   0x2   :  { %12 = vsyncpa [#allocation4], 0 }
   0x3   :  { %16 = vsyncadd [#allocation3], 64  ;;  %s17_s20 = sshll.u32 %s1390_s0, 4  ;;  %s930_s21 = smov [#allocation2]   ;;  %s18_s20 = int_to_ptr.hbm [resolvable:$true] %s17_s20 }
   0x4   :  { %s19_s22 = sshll.u32 %s930_s21, 4  ;;  %s931_s23 = smov 64   ;;  %s20_s22 = int_to_ptr.vmem [resolvable:$true] %s19_s22 }
   0x5   :  { %s932_s24 = smov 4  }
   0x6   :  { %25 = dma.hbm_to_vmem [thread:$0]  %s18_s20, 64, %s20_s22, [#allocation3], %s931_s23, %s931_s23, %s932_s24  }
   0x7   :  { %29 = vsyncadd [#allocation6], 64  ;;  %s30_s27 = sshll.u32 %s1391_s1, 4  ;;  %s933_s28 = smov [#allocation5]   ;;  %s31_s27 = int_to_ptr.hbm [resolvable:$true] %s30_s27 }
   0x8   :  { %s32_s29 = sshll.u32 %s933_s28, 4  ;;  %s47_s6 = sshll.u32 %s1394_s4, 4  ;;  %s33_s29 = int_to_ptr.vmem [resolvable:$true] %s32_s29  ;;  %s48_s6 = int_to_ptr.hbm [resolvable:$true] %s47_s6 }
   0x9   :  { %38 = dma.hbm_to_vmem [thread:$0]  %s31_s27, 64, %s33_s29, [#allocation6], %s931_s23, %s931_s23, %s932_s24  }
   0xa   :  { %s934_s7 = smov [#allocation7]   ;;  %s935_s9 = smov 128  }
   0xb   :  { %s49_s8 = sshll.u32 %s934_s7, 4  ;;  %s936_s10 = smov 8   ;;  %s50_s8 = int_to_ptr.vmem [resolvable:$true] %s49_s8 }
   0xc   :  { %55 = dma.hbm_to_vmem [thread:$0]  %s48_s6, 2048, %s50_s8, [#allocation6], %s935_s9, %s935_s9, %s936_s10  }
   0xd   :  { %924 = dma.done.wait [#allocation3], 128  }
   0xe   :  { %925 = vsyncadd [#allocation3], 4294967168 }
   0xf   :  { %926 = dma.done.wait [#allocation6], 2176  }
  0x10   :  { %927 = vsyncadd [#allocation6], 4294965120  ;;  %v86_v0 = vld [vmem:[#allocation7 + $0x78] sm:$0xff]  ;;  %v85_v1 = vld [vmem:[#allocation7 + $0x70] sm:$0xff] }
  0x11   :  { %v84_v2 = vld [vmem:[#allocation7 + $0x68] sm:$0xff]  ;;  %v983_v3 = vand.u32 4294901760, %v86_v0  ;;  %v985_v4 = vand.u32 4294901760, %v85_v1  ;;  %v83_v6 = vld [vmem:[#allocation7 + $0x60] sm:$0xff]  ;;  %v82_v7 = vld [vmem:[#allocation7 + $0x58] sm:$0xff] }
  0x12   :  { %v987_v5 = vand.u32 4294901760, %v84_v2  ;;  %v81_v8 = vld [vmem:[#allocation7 + $0x50] sm:$0xff]  ;;  %v989_v9 = vand.u32 4294901760, %v83_v6  ;;  %v991_v10 = vand.u32 4294901760, %v82_v7  ;;  %v80_v12 = vld [vmem:[#allocation7 + $0x48] sm:$0xff]  ;;  %v79_v13 = vld [vmem:[#allocation7 + $0x40] sm:$0xff] }
  0x13   :  { %v993_v11 = vand.u32 4294901760, %v81_v8  ;;  %88 = vmatpush.msra.mxu0 %v983_v3  ;;  %v997_v14 = vsub.f32 %v86_v0, %v983_v3  ;;  %v1000_v15 = vsub.f32 %v85_v1, %v985_v4  ;;  %v1005_v17 = vand.u32 4294901760, %v80_v12  ;;  %v78_v18 = vld [vmem:[#allocation7 + $0x38] sm:$0xff]  ;;  %284 = vmatpush.msra.mxu3 %v983_v3  ;;  %v77_v26 = vld [vmem:[#allocation7 + $0x30] sm:$0xff]  ;;  %v76_v36 = vld [vmem:[#allocation7 + $0x28] sm:$0xff] }
  0x14   :  { %v1003_v16 = vsub.f32 %v84_v2, %v987_v5  ;;  %v1009_v19 = vsub.f32 %v83_v6, %v989_v9  ;;  %v1012_v20 = vsub.f32 %v82_v7, %v991_v10  ;;  %v1027_v25 = vand.u32 4294901760, %v79_v13  ;;  %v75_v42 = vld [vmem:[#allocation7 + $0x20] sm:$0xff]  ;;  %v74_v47 = vld [vmem:[#allocation7 + $0x18] sm:$0xff]  ;;  %v73_v55 = vld [vmem:[#allocation7 + $0x10] sm:$0xff] }
  0x15   :  { %v1015_v21 = vsub.f32 %v81_v8, %v993_v11  ;;  %90 = vmatpush.msra.mxu0 %v985_v4  ;;  %v1019_v22 = vand.u32 4294901760, %v997_v14  ;;  %v1022_v23 = vand.u32 4294901760, %v1000_v15  ;;  %231 = vmatpush.msra.mxu2 %v997_v14  ;;  %v1033_v28 = vand.u32 4294901760, %v78_v18  ;;  %v72_v60 = vld [vmem:[#allocation7 + $0x8] sm:$0xff]  ;;  %v68_v61 = vld [vmem:[#allocation2] sm:$0xff]  ;;  %v69_v62 = vld [vmem:[#allocation5] sm:$0xff] }
  0x16   :  { %v1025_v24 = vand.u32 4294901760, %v1003_v16  ;;  %v1031_v27 = vand.u32 4294901760, %v1009_v19  ;;  %v1036_v29 = vsub.f32 %v80_v12, %v1005_v17  ;;  %286 = vmatpush.msra.mxu3 %v985_v4  ;;  %v1047_v33 = vand.u32 4294901760, %v1012_v20  ;;  %v71_v6 = vld [vmem:[#allocation7] sm:$0xff] }
  0x17   :  { %92 = vmatpush.msra.mxu0 %v987_v5  ;;  %v131_v30 = vsub.f32 %v997_v14, %v1019_v22  ;;  %v137_v31 = vsub.f32 %v1000_v15, %v1022_v23  ;;  %234 = vmatpush.msra.mxu2 %v1000_v15  ;;  %v1051_v34 = vand.u32 4294901760, %v1015_v21  ;;  %v1053_v35 = vand.u32 4294901760, %v77_v26 }
  0x18   :  { %v143_v32 = vsub.f32 %v1003_v16, %v1025_v24  ;;  %288 = vmatpush.msra.mxu3 %v987_v5  ;;  %v149_v39 = vsub.f32 %v1009_v19, %v1031_v27  ;;  %v1064_v40 = vsub.f32 %v79_v13, %v1027_v25  ;;  %v1068_v41 = vand.u32 4294901760, %v1036_v29 }
  0x19   :  { %v1056_v37 = vand.u32 4294901760, %v131_v30  ;;  %94 = vmatpush.msra.mxu0 %v989_v9  ;;  %v1059_v38 = vand.u32 4294901760, %v137_v31  ;;  %237 = vmatpush.msra.mxu2 %v1003_v16  ;;  %v155_v44 = vsub.f32 %v1012_v20, %v1047_v33  ;;  %v1077_v45 = vand.u32 4294901760, %v76_v36 }
  0x1a   :  { %1404 = vst [vmem:[#allocation12_spill] sm:$0xff] %v1064_v40  ;;  %290 = vmatpush.msra.mxu3 %v989_v9  ;;  %v1073_v43 = vand.u32 4294901760, %v143_v32  ;;  %v1080_v46 = vsub.f32 %v78_v18, %v1033_v28  ;;  %v1083_v48 = vand.u32 4294901760, %v1064_v40  ;;  %v1089_v49 = vand.u32 4294901760, %v149_v39 }
  0x1b   :  { %133 = vmatpush.msra.mxu1 %v1056_v37  ;;  %96 = vmatpush.msra.mxu0 %v991_v10  ;;  %v161_v50 = vsub.f32 %v1015_v21, %v1051_v34  ;;  %v1093_v51 = vand.u32 4294901760, %v75_v42  ;;  %v1096_v52 = vsub.f32 %v77_v26, %v1053_v35  ;;  %v167_v53 = vsub.f32 %v1036_v29, %v1068_v41 }
  0x1c   :  { %1405 = vst [vmem:[#allocation13_spill] sm:$0xff] %v1080_v46  ;;  %240 = vmatpush.msra.mxu2 %v1009_v19  ;;  %292 = vmatpush.msra.mxu3 %v991_v10  ;;  %v1100_v54 = vand.u32 4294901760, %v74_v47  ;;  %v1106_v56 = vand.u32 4294901760, %v155_v44  ;;  %v1109_v57 = vand.u32 4294901760, %v1080_v46  ;;  %v1112_v58 = vsub.f32 %v76_v36, %v1077_v45 }
  0x1d   :  { %139 = vmatpush.msra.mxu1 %v1059_v38  ;;  %98 = vmatpush.msra.mxu0 %v993_v11  ;;  %1406 = vst [vmem:[#allocation14_spill] sm:$0xff] %v1096_v52  ;;  %v173_v59 = vsub.f32 %v1064_v40, %v1083_v48  ;;  %v1120_v63 = vand.u32 4294901760, %v161_v50  ;;  %v1123_v0 = vand.u32 4294901760, %v1096_v52  ;;  %v1125_v1 = vand.u32 4294901760, %v73_v55 }
  0x1e   :  { %243 = vmatpush.msra.mxu2 %v1012_v20  ;;  %294 = vmatpush.msra.mxu3 %v993_v11  ;;  %1407 = vst [vmem:[#allocation15_spill] sm:$0xff] %v1112_v58  ;;  %v1128_v2 = vsub.f32 %v75_v42, %v1093_v51  ;;  %v1130_v7 = vand.u32 4294901760, %v167_v53  ;;  %v1133_v8 = vsub.f32 %v74_v47, %v1100_v54  ;;  %v1142_v13 = vand.u32 4294901760, %v1112_v58 }
  0x1f   :  { %145 = vmatpush.msra.mxu1 %v1073_v43  ;;  %100 = vmatpush.msra.mxu0 %v1005_v17  ;;  %v179_v12 = vsub.f32 %v1080_v46, %v1109_v57  ;;  %v1144_v18 = vand.u32 4294901760, %v72_v60  ;;  %v1146_v26 = vadd.f32 %v69_v62, %v68_v61  ;;  %v1148_v30 = vand.u32 4294901760, %v173_v59 }
  0x20   :  { %246 = vmatpush.msra.mxu2 %v1015_v21  ;;  %296 = vmatpush.msra.mxu3 %v1005_v17  ;;  %1408 = vst [vmem:[#allocation16_spill] sm:$0xff] %v1128_v2  ;;  %v1150_v31 = vand.u32 4294901760, %v71_v6  ;;  %v185_v32 = vsub.f32 %v1096_v52, %v1123_v0  ;;  %v1159_v36 = vand.u32 4294901760, %v1128_v2  ;;  %v1162_v39 = vsub.f32 %v73_v55, %v1125_v1 }
  0x21   :  { %151 = vmatpush.msra.mxu1 %v1089_v49  ;;  %102 = vmatpush.msra.mxu0 %v1027_v25  ;;  %1409 = vst [vmem:[#allocation17_spill] sm:$0xff] %v1133_v8  ;;  %v1165_v42 = vand.u32 4294901760, %v1146_v26  ;;  %v1168_v44 = vand.u32 4294901760, %v1133_v8  ;;  %v1174_v47 = vand.u32 4294901760, %v179_v12  ;;  %v191_v50 = vsub.f32 %v1112_v58, %v1142_v13 }
  0x22   :  { %249 = vmatpush.msra.mxu2 %v1036_v29  ;;  %298 = vmatpush.msra.mxu3 %v1027_v25  ;;  %1410 = vst [vmem:[#allocation18_spill] sm:$0xff] %v1146_v26  ;;  %v1179_v53 = vsub.f32 %v72_v60, %v1144_v18  ;;  %v1187_v59 = vand.u32 4294901760, %v185_v32  ;;  %v197_v61 = vsub.f32 %v1128_v2, %v1159_v36  ;;  %v1192_v62 = vand.u32 4294901760, %v1162_v39 }
  0x23   :  { %157 = vmatpush.msra.mxu1 %v1106_v56  ;;  %104 = vmatpush.msra.mxu0 %v1033_v28  ;;  %1411 = vst [vmem:[#allocation19_spill] sm:$0xff] %v1162_v39  ;;  %v120_v55 = vsub.f32 %v1146_v26, %v1165_v42  ;;  %v1195_v60 = vsub.f32 %v71_v6, %v1150_v31  ;;  %v1201_v12 = vand.u32 4294901760, %v191_v50 }
  0x24   :  { %252 = vmatpush.msra.mxu2 %v1064_v40  ;;  %300 = vmatpush.msra.mxu3 %v1033_v28  ;;  %v203_v32 = vsub.f32 %v1133_v8, %v1168_v44  ;;  %v1206_v26 = vand.u32 4294901760, %v1179_v53  ;;  %v1212_v6 = vand.u32 4294901760, %v197_v61  ;;  %v209_v50 = vsub.f32 %v1162_v39, %v1192_v62 }
  0x25   :  { %163 = vmatpush.msra.mxu1 %v1120_v63  ;;  %106 = vmatpush.msra.mxu0 %v1053_v35 }
  0x26   :  { %255 = vmatpush.msra.mxu2 %v1080_v46  ;;  %302 = vmatpush.msra.mxu3 %v1053_v35  ;;  %v215_v61 = vsub.f32 %v1179_v53, %v1206_v26 }
  0x27   :  { %169 = vmatpush.msra.mxu1 %v1130_v7  ;;  %108 = vmatpush.msra.mxu0 %v1077_v45 }
  0x28   :  { %258 = vmatpush.msra.mxu2 %v1096_v52  ;;  %304 = vmatpush.msra.mxu3 %v1077_v45  ;;  %v121_v52 = vand.u32 4294901760, %v120_v55 }
  0x29   :  { %175 = vmatpush.msra.mxu1 %v1148_v30  ;;  %110 = vmatpush.msra.mxu0 %v1093_v51 }
  0x2a   :  { %261 = vmatpush.msra.mxu2 %v1112_v58  ;;  %306 = vmatpush.msra.mxu3 %v1093_v51  ;;  %v1217_v58 = vand.u32 4294901760, %v1195_v60  ;;  %v122_v46 = vsub.f32 %v120_v55, %v121_v52 }
  0x2b   :  { %181 = vmatpush.msra.mxu1 %v1174_v47  ;;  %112 = vmatpush.msra.mxu0 %v1100_v54 }
  0x2c   :  { %264 = vmatpush.msra.mxu2 %v1128_v2  ;;  %308 = vmatpush.msra.mxu3 %v1100_v54  ;;  %v1223_v2 = vand.u32 4294901760, %v203_v32  ;;  %v221_v40 = vsub.f32 %v1195_v60, %v1217_v58  ;;  %v1238_v32 = vand.u32 4294901760, %v215_v61 }
  0x2d   :  { %187 = vmatpush.msra.mxu1 %v1187_v59  ;;  %114 = vmatpush.msra.mxu0 %v1125_v1 }
  0x2e   :  { %267 = vmatpush.msra.mxu2 %v1133_v8  ;;  %310 = vmatpush.msra.mxu3 %v1125_v1  ;;  %v1231_v8 = vand.u32 4294901760, %v209_v50  ;;  %v1244_v50 = vand.u32 4294901760, %v221_v40 }
  0x2f   :  { %193 = vmatpush.msra.mxu1 %v1201_v12  ;;  %116 = vmatpush.msra.mxu0 %v1144_v18 }
  0x30   :  { %270 = vmatpush.msra.mxu2 %v1162_v39  ;;  %312 = vmatpush.msra.mxu3 %v1144_v18  ;;  %v123_v39 = vand.u32 4294901760, %v122_v46 }
  0x31   :  { %199 = vmatpush.msra.mxu1 %v1212_v6  ;;  %118 = vmatpush.msra.mxu0 %v1150_v31 }
  0x32   :  { %273 = vmatpush.msra.mxu2 %v1179_v53  ;;  %314 = vmatpush.msra.mxu3 %v1150_v31 }
  0x33   :  { %325 = vmatpush.msrb.mxu0 %v1019_v22  ;;  %205 = vmatpush.msra.mxu1 %v1223_v2 }
  0x34   :  { %276 = vmatpush.msra.mxu2 %v1195_v60  ;;  %318 = vmatmul.f32.vlgmr.msra.gmra.mxu3 %v121_v52 }
  0x35   :  { %329 = vmatpush.msrb.mxu0 %v1022_v23  ;;  %211 = vmatpush.msra.mxu1 %v1231_v8 }
  0x36   :  { %279 = vmatmul.f32.vlgmr.msra.gmra.mxu2 %v120_v55  ;;  %124 = vmatmul.f32.vlgmr.msra.gmra.mxu0 %v123_v39 }
  0x37   :  { %333 = vmatpush.msrb.mxu0 %v1025_v24  ;;  %217 = vmatpush.msra.mxu1 %v1238_v32 }
  0x38   :  { %477 = vmatpush.msrb.mxu3 %v1056_v37  ;;  %432 = vmatpush.msrb.mxu2 %v983_v3 }
  0x39   :  { %337 = vmatpush.msrb.mxu0 %v1031_v27  ;;  %223 = vmatpush.msra.mxu1 %v1244_v50 }
  0x3a   :  { %225 = vmatmul.f32.vlgmr.msra.gmra.mxu1 %v1165_v42  ;;  %483 = vmatpush.msrb.mxu3 %v1059_v38 }
  0x3b   :  { %392 = vmatpush.msrb.mxu1 %v983_v3  ;;  %341 = vmatpush.msrb.mxu0 %v1047_v33 }
  0x3c   :  { %489 = vmatpush.msrb.mxu3 %v1073_v43  ;;  %434 = vmatpush.msrb.mxu2 %v985_v4 }
  0x3d   :  { %394 = vmatpush.msrb.mxu1 %v985_v4  ;;  %345 = vmatpush.msrb.mxu0 %v1051_v34 }
  0x3e   :  { %495 = vmatpush.msrb.mxu3 %v1089_v49  ;;  %436 = vmatpush.msrb.mxu2 %v987_v5 }
  0x3f   :  { %396 = vmatpush.msrb.mxu1 %v987_v5  ;;  %349 = vmatpush.msrb.mxu0 %v1068_v41 }
  0x40   :  { %501 = vmatpush.msrb.mxu3 %v1106_v56  ;;  %438 = vmatpush.msrb.mxu2 %v989_v9 }
  0x41   :  { %398 = vmatpush.msrb.mxu1 %v989_v9  ;;  %353 = vmatpush.msrb.mxu0 %v1083_v48 }
  0x42   :  { %507 = vmatpush.msrb.mxu3 %v1120_v63  ;;  %440 = vmatpush.msrb.mxu2 %v991_v10 }
  0x43   :  { %400 = vmatpush.msrb.mxu1 %v991_v10  ;;  %357 = vmatpush.msrb.mxu0 %v1109_v57 }
  0x44   :  { %513 = vmatpush.msrb.mxu3 %v1130_v7  ;;  %442 = vmatpush.msrb.mxu2 %v993_v11 }
  0x45   :  { %402 = vmatpush.msrb.mxu1 %v993_v11  ;;  %361 = vmatpush.msrb.mxu0 %v1123_v0 }
  0x46   :  { %519 = vmatpush.msrb.mxu3 %v1148_v30  ;;  %444 = vmatpush.msrb.mxu2 %v1005_v17 }
  0x47   :  { %404 = vmatpush.msrb.mxu1 %v1005_v17  ;;  %365 = vmatpush.msrb.mxu0 %v1142_v13 }
  0x48   :  { %525 = vmatpush.msrb.mxu3 %v1174_v47  ;;  %446 = vmatpush.msrb.mxu2 %v1027_v25 }
  0x49   :  { %406 = vmatpush.msrb.mxu1 %v1027_v25  ;;  %369 = vmatpush.msrb.mxu0 %v1159_v36 }
  0x4a   :  { %531 = vmatpush.msrb.mxu3 %v1187_v59  ;;  %448 = vmatpush.msrb.mxu2 %v1033_v28 }
  0x4b   :  { %408 = vmatpush.msrb.mxu1 %v1033_v28  ;;  %373 = vmatpush.msrb.mxu0 %v1168_v44 }
  0x4c   :  { %537 = vmatpush.msrb.mxu3 %v1201_v12  ;;  %450 = vmatpush.msrb.mxu2 %v1053_v35 }
  0x4d   :  { %410 = vmatpush.msrb.mxu1 %v1053_v35  ;;  %377 = vmatpush.msrb.mxu0 %v1192_v62 }
  0x4e   :  { %543 = vmatpush.msrb.mxu3 %v1212_v6  ;;  %452 = vmatpush.msrb.mxu2 %v1077_v45 }
  0x4f   :  { %412 = vmatpush.msrb.mxu1 %v1077_v45  ;;  %381 = vmatpush.msrb.mxu0 %v1206_v26 }
  0x50   :  { %549 = vmatpush.msrb.mxu3 %v1223_v2  ;;  %454 = vmatpush.msrb.mxu2 %v1093_v51 }
  0x51   :  { %414 = vmatpush.msrb.mxu1 %v1093_v51  ;;  %385 = vmatpush.msrb.mxu0 %v1217_v58 }
  0x52   :  { %387 = vmatmul.f32.vlgmr.msrb.gmra.mxu0 %v1165_v42  ;;  %555 = vmatpush.msrb.mxu3 %v1231_v8 }
  0x53   :  { %416 = vmatpush.msrb.mxu1 %v1100_v54  ;;  %575 = vmatpush.msra.mxu0 %v997_v14  ;;  %v1418_v14 = vld [vmem:[#allocation19_spill] sm:$0xff] }
  0x54   :  { %561 = vmatpush.msrb.mxu3 %v1238_v32  ;;  %456 = vmatpush.msrb.mxu2 %v1100_v54 }
  0x55   :  { %418 = vmatpush.msrb.mxu1 %v1125_v1  ;;  %578 = vmatpush.msra.mxu0 %v1000_v15 }
  0x56   :  { %567 = vmatpush.msrb.mxu3 %v1244_v50  ;;  %458 = vmatpush.msrb.mxu2 %v1125_v1 }
  0x57   :  { %420 = vmatpush.msrb.mxu1 %v1144_v18  ;;  %581 = vmatpush.msra.mxu0 %v1003_v16 }
  0x58   :  { %736 = vmatpush.msra.mxu3 %v983_v3  ;;  %460 = vmatpush.msrb.mxu2 %v1144_v18 }
  0x59   :  { %422 = vmatpush.msrb.mxu1 %v1150_v31  ;;  %584 = vmatpush.msra.mxu0 %v1009_v19 }
  0x5a   :  { %424 = vmatmul.f32.vlgmr.msrb.gmra.mxu1 %v1165_v42  ;;  %738 = vmatpush.msra.mxu3 %v985_v4 }
  0x5b   :  { %628 = vmatpush.msra.mxu1 %v983_v3  ;;  %587 = vmatpush.msra.mxu0 %v1012_v20  ;;  %v1412_v3 = vld [vmem:[#allocation12_spill] sm:$0xff] }
  0x5c   :  { %740 = vmatpush.msra.mxu3 %v987_v5  ;;  %462 = vmatpush.msrb.mxu2 %v1150_v31 }
  0x5d   :  { %630 = vmatpush.msra.mxu1 %v985_v4  ;;  %590 = vmatpush.msra.mxu0 %v1015_v21  ;;  %v1413_v4 = vld [vmem:[#allocation13_spill] sm:$0xff] }
  0x5e   :  { %742 = vmatpush.msra.mxu3 %v989_v9  ;;  %669 = vmatpush.msra.mxu2 %v1019_v22 }
  0x5f   :  { %632 = vmatpush.msra.mxu1 %v987_v5  ;;  %593 = vmatpush.msra.mxu0 %v1036_v29  ;;  %v1414_v5 = vld [vmem:[#allocation14_spill] sm:$0xff] }
  0x60   :  { %744 = vmatpush.msra.mxu3 %v991_v10  ;;  %673 = vmatpush.msra.mxu2 %v1022_v23  ;;  %v1419_v29 = vld [vmem:[#allocation18_spill] sm:$0xff] }
  0x61   :  { %634 = vmatpush.msra.mxu1 %v989_v9  ;;  %596 = vmatpush.msra.mxu0 %v1412_v3  ;;  %v1415_v9 = vld [vmem:[#allocation15_spill] sm:$0xff] }
  0x62   :  { %746 = vmatpush.msra.mxu3 %v993_v11  ;;  %677 = vmatpush.msra.mxu2 %v1025_v24 }
  0x63   :  { %636 = vmatpush.msra.mxu1 %v991_v10  ;;  %599 = vmatpush.msra.mxu0 %v1413_v4  ;;  %v1416_v10 = vld [vmem:[#allocation16_spill] sm:$0xff] }
  0x64   :  { %748 = vmatpush.msra.mxu3 %v1005_v17  ;;  %681 = vmatpush.msra.mxu2 %v1031_v27 }
  0x65   :  { %638 = vmatpush.msra.mxu1 %v993_v11  ;;  %602 = vmatpush.msra.mxu0 %v1414_v5  ;;  %v1417_v11 = vld [vmem:[#allocation17_spill] sm:$0xff] }
  0x66   :  { %750 = vmatpush.msra.mxu3 %v1027_v25  ;;  %685 = vmatpush.msra.mxu2 %v1047_v33 }
  0x67   :  { %640 = vmatpush.msra.mxu1 %v1005_v17  ;;  %605 = vmatpush.msra.mxu0 %v1415_v9 }
  0x68   :  { %752 = vmatpush.msra.mxu3 %v1033_v28  ;;  %689 = vmatpush.msra.mxu2 %v1051_v34 }
  0x69   :  { %642 = vmatpush.msra.mxu1 %v1027_v25  ;;  %608 = vmatpush.msra.mxu0 %v1416_v10 }
  0x6a   :  { %754 = vmatpush.msra.mxu3 %v1053_v35  ;;  %693 = vmatpush.msra.mxu2 %v1068_v41 }
  0x6b   :  { %644 = vmatpush.msra.mxu1 %v1033_v28  ;;  %611 = vmatpush.msra.mxu0 %v1417_v11 }
  0x6c   :  { %756 = vmatpush.msra.mxu3 %v1077_v45  ;;  %697 = vmatpush.msra.mxu2 %v1083_v48 }
  0x6d   :  { %646 = vmatpush.msra.mxu1 %v1053_v35  ;;  %614 = vmatpush.msra.mxu0 %v1418_v14 }
  0x6e   :  { %758 = vmatpush.msra.mxu3 %v1093_v51  ;;  %701 = vmatpush.msra.mxu2 %v1109_v57 }
  0x6f   :  { %648 = vmatpush.msra.mxu1 %v1077_v45  ;;  %617 = vmatpush.msra.mxu0 %v1179_v53 }
  0x70   :  { %760 = vmatpush.msra.mxu3 %v1100_v54  ;;  %705 = vmatpush.msra.mxu2 %v1123_v0 }
  0x71   :  { %650 = vmatpush.msra.mxu1 %v1093_v51  ;;  %620 = vmatpush.msra.mxu0 %v1195_v60 }
  0x72   :  { %762 = vmatpush.msra.mxu3 %v1125_v1  ;;  %709 = vmatpush.msra.mxu2 %v1142_v13 }
  0x73   :  { %652 = vmatpush.msra.mxu1 %v1100_v54 }
  0x74   :  { %764 = vmatpush.msra.mxu3 %v1144_v18  ;;  %713 = vmatpush.msra.mxu2 %v1159_v36  ;;  %v825_v36 = vld [vmem:[%s1393_s3] ss:$0 sm:$0xff] }
  0x75   :  { %654 = vmatpush.msra.mxu1 %v1125_v1 }
  0x76   :  { %766 = vmatpush.msra.mxu3 %v1150_v31  ;;  %717 = vmatpush.msra.mxu2 %v1168_v44 }
  0x77   :  { %656 = vmatpush.msra.mxu1 %v1144_v18 }
  0x78   :  { %721 = vmatpush.msra.mxu2 %v1192_v62 }
  0x79   :  { %658 = vmatpush.msra.mxu1 %v1150_v31 }
  0x7a   :  { %725 = vmatpush.msra.mxu2 %v1206_v26  ;;  %v824_v26 = vld [vmem:[%s1392_s2] ss:$0 sm:$0xff] }
  0x7c   :  { %729 = vmatpush.msra.mxu2 %v1217_v58 }
  0xb3   :  { %v125_v16 = vpop.f32.mrf.mxu0 }
  0xb7   :  { %v226_v15 = vpop.f32.mrf.mxu1  ;;  %v319_v21 = vpop.f32.mrf.mxu3 }
  0xb8   :  { %v227_v17 = vadd.f32 %v226_v15, %v125_v16 }
  0xb9   :  { %v280_v19 = vpop.f32.mrf.mxu2 }
  0xba   :  { %v281_v20 = vadd.f32 %v280_v19, %v227_v17 }
  0xbc   :  { %v320_v22 = vadd.f32 %v319_v21, %v281_v20 }
  0xcf   :  { %v388_v23 = vpop.f32.mrf.mxu0 }
  0xd0   :  { %v389_v24 = vadd.f32 %v388_v23, %v320_v22 }
  0xd7   :  { %v425_v25 = vpop.f32.mrf.mxu1 }
  0xd8   :  { %v426_v27 = vadd.f32 %v425_v25, %v389_v24 }
  0xda   :  { %v428_v28 = vmul.f32 0.03125, %v426_v27 }
  0xdc   :  { %v429_v33 = vsub.f32 %v1419_v29, %v428_v28 }
  0xde   :  { %v430_v34 = vmul.f32 %v429_v33, %v429_v33 }
  0xe0   :  { %v463_v35 = vand.u32 4294901760, %v430_v34 }
  0xe2   :  { %v464_v37 = vsub.f32 %v430_v34, %v463_v35  ;;  %569 = vmatmul.f32.vlgmr.msrb.gmra.mxu3 %v463_v35 }
  0xe4   :  { %623 = vmatmul.f32.vlgmr.msra.gmra.mxu0 %v464_v37  ;;  %v465_v38 = vand.u32 4294901760, %v464_v37 }
  0xe6   :  { %662 = vmatmul.f32.vlgmr.msra.gmra.mxu1 %v465_v38  ;;  %v466_v40 = vsub.f32 %v464_v37, %v465_v38 }
  0xe8   :  { %v467_v41 = vand.u32 4294901760, %v466_v40 }
  0xea   :  { %468 = vmatmul.f32.vlgmr.msrb.gmra.mxu2 %v467_v41  ;;  %768 = vmatmul.f32.vlgmr.msra.gmra.mxu3 %v463_v35 }
  0xf2   :  { %731 = vmatmul.f32.vlgmr.msra.gmra.mxu2 %v463_v35 }
 0x161   :  { %v624_v48 = vpop.f32.mrf.mxu0 }
 0x163   :  { %v663_v51 = vpop.f32.mrf.mxu1 }
 0x165   :  { %v570_v43 = vpop.f32.mrf.mxu3 }
 0x16d   :  { %v469_v45 = vpop.f32.mrf.mxu2  ;;  %v769_v57 = vpop.f32.mrf.mxu3 }
 0x16e   :  { %v571_v46 = vadd.f32 %v570_v43, %v469_v45 }
 0x170   :  { %v625_v49 = vadd.f32 %v624_v48, %v571_v46 }
 0x172   :  { %v664_v52 = vadd.f32 %v663_v51, %v625_v49 }
 0x175   :  { %v732_v54 = vpop.f32.mrf.mxu2 }
 0x176   :  { %v733_v56 = vadd.f32 %v732_v54, %v664_v52 }
 0x178   :  { %v770_v58 = vadd.f32 %v769_v57, %v733_v56 }
 0x17a   :  { %v772_v63 = vmul.f32 0.03125, %v770_v58 }
 0x17c   :  { %v773_v0 = vadd.f32 1e-05, %v772_v63 }
 0x17e   :  { %826 = vrsqrt.f32 %v773_v0  ;;  %vm780_vm1 = vweird.f32 %v773_v0 }
 0x184   :  { %v827_v1 = vpop.eup %826 }
 0x185   :  { %v775_v2 = vmul.f32 %v827_v1, %v773_v0  ;;  %vm781_vm0 = vweird.f32 %v827_v1 }
 0x186   :  { %vm782_vm2 = vmor %vm780_vm1, %vm781_vm0 }
 0x187   :  { %v776_v7 = vmul.f32 %v827_v1, %v775_v2 }
 0x189   :  { %v777_v8 = vmul.f32 0.5, %v776_v7 }
 0x18b   :  { %v778_v13 = vsub.f32 1.5, %v777_v8 }
 0x18d   :  { %v779_v18 = vmul.f32 %v827_v1, %v778_v13 }
 0x18f   :  { %v783_v30 = vsel %vm782_vm2, %v827_v1, %v779_v18 }
 0x190   :  { %v784_v31 = vmul.f32 %v783_v30, %v429_v33 }
 0x192   :  { %v789_v39 = vmul.f32 %v824_v26, %v784_v31 }
 0x194   :  { %v794_v42 = vadd.f32 %v825_v36, %v789_v39 }
 0x196   :  { %795 = vst [vmem:[#allocation8] sm:$0xff] %v794_v42 }
 0x197   :  { %799 = vsyncadd [#allocation4], 64  ;;  %s802_s15 = sshll.u32 %s1395_s5, 4  ;;  %s937_s16 = smov [#allocation8]   ;;  %s803_s15 = int_to_ptr.hbm [resolvable:$true] %s802_s15 }
 0x198   :  { %s800_s17 = sshll.u32 %s937_s16, 4  ;;  %s801_s17 = int_to_ptr.vmem [resolvable:$true] %s800_s17 }
 0x199   :  { %808 = dma.vmem_to_hbm [thread:$0]  %s801_s17, 64, %s803_s15, [#allocation4], %s931_s23, %s931_s23, %s932_s24  }
 0x19a   :  { %928 = dma.done.wait [#allocation4], 128  }
 0x19b   :  { %929 = vsyncadd [#allocation4], 4294967168 }
 0x19c   :  { %813 = vsyncpa [#allocation3], 1 }
 0x19d   :  { %814 = vsyncpa [#allocation6], 1 }
 0x19e   :  { %815 = vsyncpa [#allocation4], 1 }

</bundles_post_ra>
